<compile_context>
chip_gen: v7x
topology: tpu7x:2x2x1
jax: 0.10.0
libtpu: 0.0.40
codegen_flags: <defaults>
</compile_context>

<pallas_src>
import functools

import jax
import jax.numpy as jnp
from jax.experimental import pallas as pl
from jax.experimental.pallas import tpu as pltpu


def _linear_kernel(x_ref, wt_ref, o_ref):
    # [TB, in] @ [in, out] -> [TB, out], f32 accumulation on the MXU.
    o_ref[...] = jnp.dot(
        x_ref[...], wt_ref[...], preferred_element_type=jnp.float32
    ).astype(o_ref.dtype)


@functools.partial(jax.jit, static_argnames=("block_b",))
def _linear_forward_padded(x, wt, *, block_b):
    """x: [B, input_dim] with B % block_b == 0; wt: [input_dim, output_dim]."""
    B, input_dim = x.shape
    output_dim = wt.shape[1]
    grid = (B // block_b,)

    cost = pl.CostEstimate(
        flops=2 * B * input_dim * output_dim,
        transcendentals=0,
        bytes_accessed=4 * (B * input_dim + input_dim * output_dim
                            + B * output_dim),
    )

    return pl.pallas_call(
        _linear_kernel,
        out_shape=jax.ShapeDtypeStruct((B, output_dim), x.dtype),
        grid_spec=pl.GridSpec(
            grid=grid,
            in_specs=[
                # batch-tiled input
                pl.BlockSpec((block_b, input_dim), lambda i: (i, 0)),
                # full weight, grid-invariant (constant block index -> resident)
                pl.BlockSpec((input_dim, output_dim), lambda i: (0, 0)),
            ],
            out_specs=pl.BlockSpec((block_b, output_dim), lambda i: (i, 0)),
        ),
        compiler_params=pltpu.CompilerParams(
            dimension_semantics=("parallel",)),
        cost_estimate=cost,
    )(x, wt)


def linear_regression_forward(x, W, *, block_b=256):
    """Forward pass of LinearRegressionModel.

    x: [B, input_dim] float32
    W: [output_dim, input_dim] float32  (PyTorch nn.Parameter layout)
    returns: [B, output_dim] = x @ W.T
    """
    B, input_dim = x.shape
    output_dim, w_in = W.shape
    assert w_in == input_dim, "weight / input dim mismatch"

    wt = W.T  # [input_dim, output_dim] so the kernel does x @ Wt

    # Effective batch tile: <= block_b, multiple of 8 (sublane constraint),
    # at least 8.  Pad the batch so it divides evenly, slice afterwards.
    eff_block = min(block_b, B)
    eff_block = max(8, (eff_block // 8) * 8)
    assert eff_block % 8 == 0

    pad_b = (-B) % eff_block
    if pad_b:
        x = jnp.pad(x, ((0, pad_b), (0, 0)))

    out = _linear_forward_padded(x, wt, block_b=eff_block)
    if pad_b:
        out = out[:B]
    return out


def reference_forward(x, W):
    return x @ W.T


if __name__ == "__main__":
    input_dim = 16
    output_dim = 4
    batch = 8

    key = jax.random.PRNGKey(0)
    k_x, k_w = jax.random.split(key)

    x = jax.random.normal(k_x, (batch, input_dim), dtype=jnp.float32)
    # Matches the PyTorch init intent: W ~ N(0, 1), shape [output_dim, input_dim]
    W = jax.random.normal(k_w, (output_dim, input_dim), dtype=jnp.float32)

    out = linear_regression_forward(x, W)
    out = jax.block_until_ready(out)

    ref = reference_forward(x, W)
    assert out.shape == (batch, output_dim)
    assert jnp.allclose(out, ref, atol=1e-5, rtol=1e-5), "mismatch vs reference"

    print("KERNEL_OK")
</pallas_src>

<mosaic_0001>
module attributes {stable_mosaic.version = 11 : i64} {
  func.func @_linear_kernel(%arg0: i32, %arg1: memref<8x16xf32, #tpu.memory_space<vmem>>, %arg2: memref<16x4xf32, #tpu.memory_space<vmem>>, %arg3: memref<8x4xf32, #tpu.memory_space<vmem>>) attributes {dimension_semantics = [#tpu.dimension_semantics<parallel>], iteration_bounds = array<i64: 1>, scalar_prefetch = 0 : i64, scratch_operands = 0 : i64, tpu.core_type = #tpu.core_type<tc>, window_params = [{transform_indices = @transform_0, window_bounds = array<i64: 8, 16>}, {pipeline_mode = #tpu.pipeline_mode<synchronous>, transform_indices = @transform_1, window_bounds = array<i64: 16, 4>}, {transform_indices = @transform_2, window_bounds = array<i64: 8, 4>}]} {
    %c0 = arith.constant 0 : index
    %c0_0 = arith.constant 0 : index
    %0 = vector.load %arg1[%c0, %c0_0] : memref<8x16xf32, #tpu.memory_space<vmem>>, vector<8x16xf32>
    %c0_1 = arith.constant 0 : index
    %c0_2 = arith.constant 0 : index
    %1 = vector.load %arg2[%c0_1, %c0_2] : memref<16x4xf32, #tpu.memory_space<vmem>>, vector<16x4xf32>
    %cst = arith.constant dense<0.000000e+00> : vector<8x4xf32>
    %2 = tpu.matmul %0, %1, %cst {dimension_numbers = #tpu.dot_dimension_numbers<[1], [0], [0], [1], [0, 0, 1, 1], [], []>} : vector<8x16xf32>, vector<16x4xf32>, vector<8x4xf32> -> vector<8x4xf32>
    %c0_3 = arith.constant 0 : index
    %c0_4 = arith.constant 0 : index
    %3 = vector.load %arg3[%c0_3, %c0_4] : memref<8x4xf32, #tpu.memory_space<vmem>>, vector<8x4xf32>
    tpu.vector_store %arg3[%c0_3, %c0_4], %2 {strides = array<i32>} : memref<8x4xf32, #tpu.memory_space<vmem>>, vector<8x4xf32>,
    return
  }
  func.func @transform_0(%arg0: i32) -> (i32, i32) {
    %c0_i32 = arith.constant 0 : i32
    %c0_i32_0 = arith.constant 0 : i32
    return %arg0, %c0_i32 : i32, i32
  }
  func.func @transform_1(%arg0: i32) -> (i32, i32) {
    %c0_i32 = arith.constant 0 : i32
    %c0_i32_0 = arith.constant 0 : i32
    %c0_i32_1 = arith.constant 0 : i32
    return %c0_i32, %c0_i32_0 : i32, i32
  }
  func.func @transform_2(%arg0: i32) -> (i32, i32) {
    %c0_i32 = arith.constant 0 : i32
    %c0_i32_0 = arith.constant 0 : i32
    return %arg0, %c0_i32 : i32, i32
  }
}

</mosaic_0001>

<bundles_post_ra>
// kernel: _linear_forward_padded.1
= control target key start
LH: loop header
LB: loop body
LE: loop exit
PB: predicated region body
PF: predicated region fallthrough
CT: control target
= control target key end

     0   :  { %v111_v0 = vmov 0.0|0.0   ;;  %vm112_vm0 = vmmov 0   ;;  %v113_v3 = vmov 0.0   ;;  %vm14_vm1 = vcmask 130048   ;;  %s141_s1 = inlined_call_operand.vmem [shape: f32[16,4], index: 1, kind: input, shape index: {}]   ;;  %s142_s0 = inlined_call_operand.vmem [shape: f32[8,16], index: 0, kind: input, shape index: {}]   ;;  %s143_s2 = inlined_call_operand.vmem [shape: f32[8,4], index: 2, kind: output, shape index: {}]  }
   0x1   :  { %105 = vmatprep.subr.bf16.mxu0 %v111_v0  ;;  %v12_v1 = vld [vmem:[%s141_s1] sm:$0xff]  ;;  %v13_v2 = vld [vmem:[%s141_s1 + $0x8] sm:$0xff]  ;;  %102 = vmatprep.mubr.msk.f32.mxu0 %vm112_vm0, %v113_v3  ;;  %vm88_vm2 = vcmask 31744  }
   0x2   :  { %v106_v4 = vpack.c.bf16 %v13_v2, %v12_v1  ;;  %v11_v5 = vld [vmem:[%s142_s0] sm:$0xff] }
   0x4   :  { %107 = vmatpush3.bf16.msra.mxu0 %v106_v4 }
   0x7   :  { %103 = vmatmul.mubr.msk.f32.vlgmr.msra.gmra.mrb[0].mxu0 %vm14_vm1, %v11_v5 }
  0xda   :  { %v84_v6 = vpop.f32.mrb[0].mxu0 }
  0xdb   :  { %89 = vst.msk [vmem:[%s143_s2] sm:$0xff] %vm88_vm2, %v84_v6  ;;  %v104_v7 = vpop.f32.mrb[1].mxu0 }

</bundles_post_ra>
